<compile_context>
chip_gen: v6e
topology: v6e:2x2x1
jax: 0.10.0
libtpu: 0.0.40
codegen_flags: <defaults>
</compile_context>

<pallas_src>
import numpy as np
import jax
import jax.numpy as jnp
from jax.experimental import pallas as pl
from jax.experimental.pallas import tpu as pltpu

EPS = float(np.finfo(np.float32).eps)

_LANE = 128
_VMEM_BUDGET_BYTES = 8 << 20   # per-kernel working-set target (fits v7x's 64 MiB easily)
_MAX_TB = 8192                 # keep blocks modest so the pipeline has >1 step to overlap


def _nll_kernel(lam_ref, Lam_ref, o_ref):
    # lam_ref: (1, TB)  intensity at event time (batch on lanes)
    # Lam_ref: (C, TB)  integrated intensities per event type (batch on lanes)
    # o_ref:   (1, TB)  f32 negative log-likelihood
    lam = lam_ref[...].astype(jnp.float32)                  # (1, TB)
    Lam = Lam_ref[...].astype(jnp.float32)                  # (C, TB)
    neg_log = -jnp.log(lam + EPS)                           # EUP slot
    total = jnp.sum(Lam, axis=0, keepdims=True)             # XLU slot, sublane reduce
    o_ref[...] = neg_log + total


def _choose_tb(b_padded, c, itemsize):
    # Double-buffered footprint per lane: inputs (C+1 rows) + f32 output row.
    per_lane = 2 * ((c + 1) * itemsize + 4)
    tb = _VMEM_BUDGET_BYTES // max(per_lane, 1)
    tb = max(_LANE, (tb // _LANE) * _LANE)
    tb = min(tb, _MAX_TB, b_padded)
    return int(tb)


def max_loglike_per_sample(lambda_t, Lambda_t, c=None, *, min_pallas_batch=0):
    """lambda_t: (B,1), Lambda_t: (B,C), c: (B,1) int (unused) -> (B,) f32 nll."""
    B = lambda_t.shape[0]
    C = Lambda_t.shape[1]

    # For tiny production batches a fused XLA expression beats kernel launch
    # overhead; keep the kernel path for the test by defaulting the threshold to 0.
    if B < min_pallas_batch:
        return (-jnp.log(lambda_t[:, 0].astype(jnp.float32) + EPS)
                + jnp.sum(Lambda_t.astype(jnp.float32), axis=1))

    # Lane-dense layout: batch on the lane axis.
    lam = jnp.reshape(lambda_t, (1, B))        # (1, B)  (column -> row, no data move)
    Lam = jnp.transpose(Lambda_t, (1, 0))      # (C, B)

    # Pad batch up to a lane multiple so block last-dims are 128-divisible.
    Bp = max(_LANE, ((B + _LANE - 1) // _LANE) * _LANE)
    if Bp != B:
        # Pad lambda with 1.0 so log() on padded lanes stays finite (discarded anyway).
        lam = jnp.pad(lam, ((0, 0), (0, Bp - B)), constant_values=1.0)
        Lam = jnp.pad(Lam, ((0, 0), (0, Bp - B)))

    itemsize = max(jnp.dtype(lambda_t.dtype).itemsize, jnp.dtype(Lambda_t.dtype).itemsize)
    TB = _choose_tb(Bp, C, itemsize)
    grid = (pl.cdiv(Bp, TB),)

    out = pl.pallas_call(
        _nll_kernel,
        out_shape=jax.ShapeDtypeStruct((1, Bp), jnp.float32),
        grid_spec=pl.GridSpec(
            grid=grid,
            in_specs=[
                pl.BlockSpec((1, TB), lambda i: (0, i)),   # lambda_t, lane-dense
                pl.BlockSpec((C, TB), lambda i: (0, i)),   # Lambda_t, lane-dense
            ],
            out_specs=pl.BlockSpec((1, TB), lambda i: (0, i)),
        ),
        compiler_params=pltpu.CompilerParams(
            dimension_semantics=("parallel",),             # shard batch tiles across TCs (v7x)
            vmem_limit_bytes=32 * 1024 * 1024,
        ),
    )(lam, Lam)

    return out[0, :B]  # (B,) — lane-dense slab, slicing the row is free


def _reference(lambda_t, Lambda_t, c=None):
    return (-jnp.log(lambda_t[:, 0].astype(jnp.float32) + EPS)
            + jnp.sum(Lambda_t.astype(jnp.float32), axis=1))


if __name__ == "__main__":
    key = jax.random.PRNGKey(0)
    k1, k2, k3 = jax.random.split(key, 3)

    B, num_type = 8, 4
    # Intensities are positive in a point process; use softplus positives.
    lambda_t = jax.nn.softplus(jax.random.normal(k1, (B, 1), dtype=jnp.float32))
    Lambda_t = jax.nn.softplus(jax.random.normal(k2, (B, num_type), dtype=jnp.float32))
    c = jax.random.randint(k3, (B, 1), 0, num_type, dtype=jnp.int32)  # unused in forward

    nll = jax.block_until_ready(max_loglike_per_sample(lambda_t, Lambda_t, c))
    ref = _reference(lambda_t, Lambda_t, c)

    assert nll.shape == (B,)
    np.testing.assert_allclose(np.asarray(nll), np.asarray(ref), rtol=1e-6, atol=1e-6)

    # Also exercise a larger, non-multiple-of-128 batch to cover tiling + padding.
    B2, C2 = 1000, 5
    k4, k5 = jax.random.split(k3)
    lt2 = jax.nn.softplus(jax.random.normal(k4, (B2, 1), dtype=jnp.float32))
    Lt2 = jax.nn.softplus(jax.random.normal(k5, (B2, C2), dtype=jnp.float32))
    nll2 = jax.block_until_ready(max_loglike_per_sample(lt2, Lt2))
    np.testing.assert_allclose(np.asarray(nll2), np.asarray(_reference(lt2, Lt2)),
                               rtol=1e-6, atol=1e-6)

    print("KERNEL_OK")
</pallas_src>

<mosaic_0001>
module attributes {stable_mosaic.version = 11 : i64} {
  func.func @_nll_kernel(%arg0: i32, %arg1: memref<1x128xf32, #tpu.memory_space<vmem>>, %arg2: memref<4x128xf32, #tpu.memory_space<vmem>>, %arg3: memref<1x128xf32, #tpu.memory_space<vmem>>) attributes {dimension_semantics = [#tpu.dimension_semantics<parallel>], iteration_bounds = array<i64: 1>, scalar_prefetch = 0 : i64, scratch_operands = 0 : i64, tpu.core_type = #tpu.core_type<tc>, window_params = [{transform_indices = @transform_0, window_bounds = array<i64: 1, 128>}, {transform_indices = @transform_1, window_bounds = array<i64: 4, 128>}, {transform_indices = @transform_2, window_bounds = array<i64: 1, 128>}]} {
    %c0 = arith.constant 0 : index
    %c0_0 = arith.constant 0 : index
    %0 = vector.load %arg1[%c0, %c0_0] : memref<1x128xf32, #tpu.memory_space<vmem>>, vector<1x128xf32>
    %c0_1 = arith.constant 0 : index
    %c0_2 = arith.constant 0 : index
    %1 = vector.load %arg2[%c0_1, %c0_2] : memref<4x128xf32, #tpu.memory_space<vmem>>, vector<4x128xf32>
    %cst = arith.constant 1.1920929E-7 : f32
    %2 = vector.broadcast %cst : f32 to vector<1x128xf32>
    %3 = arith.addf %0, %2 : vector<1x128xf32>
    %4 = math.log %3 : vector<1x128xf32>
    %cst_3 = arith.constant 0.000000e+00 : f32
    %5 = vector.broadcast %cst_3 : f32 to vector<1x128xf32>
    %6 = arith.subf %5, %4 : vector<1x128xf32>
    %cst_4 = arith.constant dense<0.000000e+00> : vector<128xf32>
    %7 = vector.multi_reduction <add>, %1, %cst_4 [0] : vector<4x128xf32> to vector<128xf32>
    %8 = vector.shape_cast %7 : vector<128xf32> to vector<1x128xf32>
    %9 = arith.addf %6, %8 : vector<1x128xf32>
    %c0_5 = arith.constant 0 : index
    %c0_6 = arith.constant 0 : index
    %10 = vector.load %arg3[%c0_5, %c0_6] : memref<1x128xf32, #tpu.memory_space<vmem>>, vector<1x128xf32>
    tpu.vector_store %arg3[%c0_5, %c0_6], %9 {strides = array<i32>} : memref<1x128xf32, #tpu.memory_space<vmem>>, vector<1x128xf32>,
    return
  }
  func.func @transform_0(%arg0: i32) -> (i32, i32) {
    %c0_i32 = arith.constant 0 : i32
    %c0_i32_0 = arith.constant 0 : i32
    return %c0_i32, %arg0 : i32, i32
  }
  func.func @transform_1(%arg0: i32) -> (i32, i32) {
    %c0_i32 = arith.constant 0 : i32
    %c0_i32_0 = arith.constant 0 : i32
    return %c0_i32, %arg0 : i32, i32
  }
  func.func @transform_2(%arg0: i32) -> (i32, i32) {
    %c0_i32 = arith.constant 0 : i32
    %c0_i32_0 = arith.constant 0 : i32
    return %c0_i32, %arg0 : i32, i32
  }
}

</mosaic_0001>

<bundles_post_ra>
// kernel: tpu_custom_call.1
= control target key start
LH: loop header
LB: loop body
LE: loop exit
PB: predicated region body
PF: predicated region fallthrough
CT: control target
= control target key end

     0   :  { %7 = vsyncpa [#allocation3], 0  ;;  %s166_s0 = inlined_call_operand.hbm [shape: f32[1,128], index: 0, kind: input, shape index: {}]   ;;  %s167_s1 = inlined_call_operand.hbm [shape: f32[4,128], index: 1, kind: input, shape index: {}]   ;;  %s168_s2 = inlined_call_operand.hbm [shape: f32[1,128], index: 2, kind: output, shape index: {}]  }
   0x1   :  { %8 = vsyncpa [#allocation6], 0 }
   0x2   :  { %9 = vsyncpa [#allocation4], 0  ;;  %s139_s9 = smov [#allocation2]   ;;  %s140_s11 = smov [#allocation5]  }
   0x3   :  { %s16_s10 = sshll.u32 %s139_s9, 4  ;;  %s26_s12 = sshll.u32 %s140_s11, 4  ;;  %s17_s10 = int_to_ptr.vmem [resolvable:$true] %s16_s10  ;;  %s27_s12 = int_to_ptr.vmem [resolvable:$true] %s26_s12 }
   0x4   :  { %s81_s13 = scalar_lea.vmem %s17_s10, 16  ;;  %s85_s14 = scalar_lea.vmem %s17_s10, 32 }
   0x5   :  { %p82_p0 = scmp.ne.s32.totalorder %s17_s10, %s81_s13  ;;  %p86_p1 = scmp.lt.s32.totalorder %s17_s10, %s17_s10 }
   0x6   :  { %p87_p2 = scmp.lt.s32.totalorder %s85_s14, %s81_s13 }
   0x8   :  { %p88_p3 = por %p87_p2, %p86_p1 }
   0xa   :  { %p89_p4 = pnand %p88_p3, %p82_p0 }
   0xc   :  { %92 = shalt.err (!%p89_p4)
}
   0xd   :  { %19 = dma.hbm_to_vmem [thread:$0]  %s166_s0, 16, %s17_s10, [#allocation3]  }
   0xe   :  { %s101_s17 = scalar_lea.vmem %s27_s12, 64  ;;  %p106_p6 = scmp.lt.s32.totalorder %s27_s12, %s27_s12 }
   0xf   :  { %p102_p5 = scmp.ne.s32.totalorder %s27_s12, %s101_s17  ;;  %p107_p7 = scmp.lt.s32.totalorder %s101_s17, %s101_s17 }
  0x11   :  { %p108_p8 = por %p107_p7, %p106_p6 }
  0x13   :  { %p109_p9 = pnand %p108_p8, %p102_p5 }
  0x15   :  { %112 = shalt.err (!%p109_p9)
}
  0x16   :  { %29 = dma.hbm_to_vmem [thread:$0]  %s167_s1, 64, %s27_s12, [#allocation6]  }
  0x17   :  { %133 = dma.done.wait [#allocation3], 16  }
  0x18   :  { %134 = vsyncadd [#allocation3], 4294967280 }
  0x19   :  { %135 = dma.done.wait [#allocation6], 64  }
  0x1a   :  { %136 = vsyncadd [#allocation6], 4294967232  ;;  %vm42_vm0 = vcmask 1043456   ;;  %v36_v0 = vld [vmem:[#allocation2] sm:$0x1]  ;;  %s141_s0 = smov [#allocation7]  }
  0x1b   :  { %v37_v1 = vld [vmem:[#allocation5] sm:$0xf]  ;;  %v38_v2 = vadd.f32 1.1920929e-07, %v36_v0  ;;  %s58_s1 = sshll.u32 %s141_s0, 4  ;;  %s59_s1 = int_to_ptr.vmem [resolvable:$true] %s58_s1 }
  0x1c   :  { %v43_v3 = vsel %vm42_vm0, %v37_v1, 0.0  ;;  %s113_s20 = scalar_lea.vmem %s59_s1, 16  ;;  %s117_s21 = scalar_lea.vmem %s59_s1, 32 }
  0x1d   :  { %v44_v4 = vrot.slane %v43_v3, 4  ;;  %71 = vlog2.f32 %v38_v2  ;;  %p114_p10 = scmp.ne.s32.totalorder %s59_s1, %s113_s20  ;;  %p118_p11 = scmp.lt.s32.totalorder %s59_s1, %s59_s1 }
  0x1e   :  { %p119_p12 = scmp.lt.s32.totalorder %s117_s21, %s113_s20 }
  0x1f   :  { %v45_v5 = vadd.f32 %v44_v4, %v43_v3 }
  0x20   :  { %p120_p13 = por %p119_p12, %p118_p11 }
  0x21   :  { %v46_v6 = vrot.slane %v45_v5, 2 }
  0x22   :  { %p121_p0 = pnand %p120_p13, %p114_p10 }
  0x23   :  { %v47_v7 = vadd.f32 %v46_v6, %v45_v5 }
  0x25   :  { %v48_v8 = vrot.slane %v47_v7, 1 }
  0x27   :  { %v49_v11 = vadd.f32 %v48_v8, %v47_v7 }
  0x2a   :  { %v72_v9 = vpop.eup %71 }
  0x2b   :  { %v40_v10 = vmul.f32 0.6931472, %v72_v9 }
  0x2d   :  { %v41_v12 = vsub.f32 0.0, %v40_v10 }
  0x2f   :  { %v50_v13 = vadd.f32 %v49_v11, %v41_v12 }
  0x31   :  { %51 = vst [vmem:[#allocation7] sm:$0x1] %v50_v13 }
  0x32   :  { %124 = shalt.err (!%p121_p0)
}
  0x33   :  { %61 = dma.vmem_to_hbm [thread:$0]  %s59_s1, 16, %s168_s2, [#allocation4]  }
  0x34   :  { %137 = dma.done.wait [#allocation4], 16  }
  0x35   :  { %138 = vsyncadd [#allocation4], 4294967280 }
  0x36   :  { %65 = vsyncpa [#allocation3], 1 }
  0x37   :  { %66 = vsyncpa [#allocation6], 1 }
  0x38   :  { %67 = vsyncpa [#allocation4], 1 }

</bundles_post_ra>
